<compile_context>
chip_gen: v7x
topology: tpu7x:2x2x1
jax: 0.10.0
libtpu: 0.0.40
codegen_flags: <defaults>
</compile_context>

<pallas_src>
import jax
import jax.numpy as jnp
from jax import lax
from jax.experimental import pallas as pl
from jax.experimental.pallas import tpu as pltpu

EPS = 1e-12  # torch F.normalize default eps


def coda_prompt_kernel(x_ref, w_ref, p_ref, out_ref):
    """One layer per grid step.

    x_ref  : (B, D)       query (resident across the layer grid axis)
    w_ref  : (2*Ktp, D)   [W1 ; W2] = [softmax(A)*n_K ; softmax(A)^2], Kt padded
    p_ref  : (Ktp, L*E)   prompts flattened over (length, emb), Kt padded
    out_ref: (B, L*E)     P_ = einsum('bk,kle->ble', aq_k, p), flattened
    """
    x = x_ref[...]
    B = x.shape[0]
    ktp = p_ref.shape[0]

    # Single MXU pass for both the numerator and denominator matmuls:
    #   [x ; x*x] (2B, D)  contracted-on-D with  [W1 ; W2] (2*Ktp, D)
    # (rhs contracting dim 1 -> MXU consumes it transposed, no XLU transpose).
    xs = jnp.concatenate([x, x * x], axis=0)                        # (2B, D)
    scores = lax.dot_general(
        xs, w_ref[...],
        dimension_numbers=(((1,), (1,)), ((), ())),
        preferred_element_type=jnp.float32)                         # (2B, 2*Ktp)

    num = scores[:B, :ktp]       # <x * A_sm[k], n_K[k]>
    den_sq = scores[B:, ktp:]    # || x * A_sm[k] ||^2  (non-negative by construction)

    # 1 / max(||.||, EPS)  ==  rsqrt(max(||.||^2, EPS^2)); rsqrt runs on the EUP slot.
    # Zero-padded Kt rows give num == 0 exactly, so they contribute nothing.
    aq_k = num * lax.rsqrt(jnp.maximum(den_sq, EPS * EPS))          # (B, Ktp)

    out_ref[...] = jnp.dot(aq_k, p_ref[...],
                           preferred_element_type=jnp.float32)      # (B, L*E)


def precompute_layer_params(params, e_layers, task_id, eps=EPS):
    """Hoist all parameter-only math out of the hot path (cache per task_id).

    Returns stacked per-layer tensors (all layers share the same Kt here):
      W : (n_layers, 2*Ktp, D)   [softmax(A)*normalize(K) ; softmax(A)^2], zero-padded to Ktp (mult of 8)
      p : (n_layers, Ktp, L*E)   prompts flattened + zero-padded
    """
    Ws, Ps = [], []
    L = E = None
    for l in e_layers:
        K = jnp.concatenate([params[f'e_k_{l}_{t}'] for t in range(task_id + 1)], axis=0)
        A = jnp.concatenate([params[f'e_a_{l}_{t}'] for t in range(task_id + 1)], axis=0)
        p = jnp.concatenate([params[f'e_p_{l}_{t}'] for t in range(task_id + 1)], axis=0)
        Kt, D = K.shape
        L, E = p.shape[1], p.shape[2]

        A_sm = jax.nn.softmax(A.astype(jnp.float32), axis=1)
        Kf = K.astype(jnp.float32)
        n_K = Kf / jnp.maximum(jnp.linalg.norm(Kf, axis=1, keepdims=True), eps)

        ktp = max(8, -(-Kt // 8) * 8)                     # pad Kt to a sublane multiple
        pad = ((0, ktp - Kt), (0, 0))
        W = jnp.concatenate([jnp.pad(A_sm * n_K, pad),    # numerator weights
                             jnp.pad(A_sm * A_sm, pad)],  # denominator weights
                            axis=0)                       # (2*Ktp, D)
        p_flat = jnp.pad(p.astype(jnp.float32).reshape(Kt, L * E), pad)  # (Ktp, L*E)
        Ws.append(W)
        Ps.append(p_flat)

    return {'W': jnp.stack(Ws, axis=0),
            'p': jnp.stack(Ps, axis=0),
            'e_layers': tuple(e_layers),
            'L': L, 'E': E}


@jax.jit
def _coda_pallas(x_querry, W_all, p_all):
    """Gridded pallas_call: one grid step per layer slab in W_all/p_all."""
    n_layers, two_ktp, D = W_all.shape
    _, ktp, LE = p_all.shape
    B = x_querry.shape[0]
    # NOTE: for large B, add a second "parallel" grid axis tiling B in >=512-row
    # blocks; at the module's tiny B the single layer axis is the only lever.
    return pl.pallas_call(
        coda_prompt_kernel,
        out_shape=jax.ShapeDtypeStruct((n_layers, B, LE), jnp.float32),
        grid_spec=pltpu.PrefetchScalarGridSpec(
            num_scalar_prefetch=0,
            grid=(n_layers,),
            in_specs=[
                pl.BlockSpec((B, D), lambda i: (0, 0)),                        # x resident
                pl.BlockSpec((pl.Squeezed(), two_ktp, D), lambda i: (i, 0, 0)),
                pl.BlockSpec((pl.Squeezed(), ktp, LE), lambda i: (i, 0, 0)),
            ],
            out_specs=pl.BlockSpec((pl.Squeezed(), B, LE), lambda i: (i, 0, 0)),
        ),
        compiler_params=pltpu.CompilerParams(
            dimension_semantics=("parallel",)),   # layers independent -> megacore on v7x
    )(x_querry, W_all, p_all)


def coda_prompt_forward(x_querry, l, x_block, prep):
    """Mirrors CodaPromptSpecific.forward(train=False) for a single layer l."""
    e_layers = prep['e_layers']
    if l not in e_layers:
        return None, 0, x_block
    idx = e_layers.index(l)
    P_flat = _coda_pallas(x_querry,
                          prep['W'][idx:idx + 1],
                          prep['p'][idx:idx + 1])                   # (1, B, L*E)
    L, E = prep['L'], prep['E']
    P_ = P_flat[0].reshape(x_querry.shape[0], L, E)
    i = L // 2
    return [P_[:, :i, :], P_[:, i:, :]], 0, x_block


def coda_prompt_forward_all_layers(x_querry, x_block, prep):
    """All e_layers fused into one pallas_call (same x_querry at every layer,
    matching how CODA-Prompt queries the frozen encoder once per batch)."""
    P_flat = _coda_pallas(x_querry, prep['W'], prep['p'])           # (n_layers, B, L*E)
    L, E = prep['L'], prep['E']
    B = x_querry.shape[0]
    i = L // 2
    out = {}
    for idx, l in enumerate(prep['e_layers']):
        P_ = P_flat[idx].reshape(B, L, E)
        out[l] = [P_[:, :i, :], P_[:, i:, :]]
    return out, 0, x_block


def _reference_forward(x_querry, A, K, p):
    """Pure-JAX reference matching the PyTorch einsum path."""
    A_sm = jax.nn.softmax(A, axis=1)
    a_querry = jnp.einsum('bd,kd->bkd', x_querry, A_sm)
    n_K = K / jnp.maximum(jnp.linalg.norm(K, axis=1, keepdims=True), EPS)
    q = a_querry / jnp.maximum(jnp.linalg.norm(a_querry, axis=2, keepdims=True), EPS)
    aq_k = jnp.einsum('bkd,kd->bk', q, n_K)
    return jnp.einsum('bk,kld->bld', aq_k, p)


if __name__ == "__main__":
    key = jax.random.PRNGKey(0)

    # Small, forward-consistent shapes
    emb_d, key_d, e_p_length = 32, 32, 8
    n_tasks = 10
    n_prompts_per_tasks = {0: 5, 1: 13, 2: 13, 3: 13, 4: 13,
                           5: 13, 6: 5, 7: 5, 8: 13, 9: 5}
    # prompt_param = [e_pool_size, e_p_length, 0, 0, 0] -> e_layers=[0..4],
    # attention=True, attention_softmax=True (default eval path)
    e_layers = [0, 1, 2, 3, 4]
    task_id = 0

    # Deterministic synthetic parameter init (module's init_prompts(task_id=0)).
    # TODO(synk): torch uses nn.init.orthogonal_; deterministic uniform used here (synthetic weights).
    params = {}
    for e in e_layers:
        for t in range(n_tasks):
            n = n_prompts_per_tasks[t]
            key, k1, k2, k3 = jax.random.split(key, 4)
            params[f'e_p_{e}_{t}'] = jax.random.uniform(k1, (n, e_p_length, emb_d), jnp.float32)
            params[f'e_k_{e}_{t}'] = jax.random.uniform(k2, (n, key_d), jnp.float32)
            params[f'e_a_{e}_{t}'] = jax.random.uniform(k3, (n, key_d), jnp.float32)

    B = 2
    key, kx, kb = jax.random.split(key, 3)
    x_querry = jax.random.normal(kx, (B, key_d), jnp.float32)    # (B, key_d)
    x_block = jax.random.normal(kb, (B, 8, emb_d), jnp.float32)  # pass-through

    # One-shot precompute (softmax, normalize, concat, padding) -- cached per task_id,
    # outside the hot path.
    prep = precompute_layer_params(params, e_layers, task_id)
    jax.block_until_ready((prep['W'], prep['p']))

    # Fused path: all e_layers in a single gridded pallas_call.
    all_out, loss_all, xb_all = coda_prompt_forward_all_layers(x_querry, x_block, prep)
    jax.block_until_ready(jax.tree_util.tree_leaves(all_out))

    # Per-layer path (module forward semantics), layer 0.
    p_return, loss, xb = coda_prompt_forward(x_querry, 0, x_block, prep)
    Ek, Ev = p_return
    jax.block_until_ready((Ek, Ev, xb))

    # Correctness vs a pure-JAX reference of the torch einsum path, every layer.
    i = e_p_length // 2
    for l in e_layers:
        K_cat = jnp.concatenate([params[f'e_k_{l}_{t}'] for t in range(task_id + 1)], axis=0)
        A_cat = jnp.concatenate([params[f'e_a_{l}_{t}'] for t in range(task_id + 1)], axis=0)
        p_cat = jnp.concatenate([params[f'e_p_{l}_{t}'] for t in range(task_id + 1)], axis=0)
        P_ref = _reference_forward(x_querry, A_cat, K_cat, p_cat)
        Ek_l, Ev_l = all_out[l]
        assert jnp.allclose(Ek_l, P_ref[:, :i, :], atol=1e-5, rtol=1e-5)
        assert jnp.allclose(Ev_l, P_ref[:, i:, :], atol=1e-5, rtol=1e-5)

    # Per-layer path matches the fused path for layer 0; pass-throughs intact.
    assert jnp.allclose(Ek, all_out[0][0], atol=1e-6, rtol=1e-6)
    assert jnp.allclose(Ev, all_out[0][1], atol=1e-6, rtol=1e-6)
    assert jnp.allclose(xb, x_block) and jnp.allclose(xb_all, x_block)
    assert loss == 0 and loss_all == 0

    # Layer not in e_layers -> pass-through (e_valid False branch).
    pn, l2, xb2 = coda_prompt_forward(x_querry, 7, x_block, prep)
    assert pn is None and l2 == 0 and jnp.allclose(xb2, x_block)

    print("KERNEL_OK")
</pallas_src>

<mosaic_0001>
module attributes {stable_mosaic.version = 11 : i64} {
  func.func @coda_prompt_kernel(%arg0: i32, %arg1: memref<2x32xf32, #tpu.memory_space<vmem>>, %arg2: memref<1x16x32xf32, #tpu.memory_space<vmem>>, %arg3: memref<1x8x256xf32, #tpu.memory_space<vmem>>, %arg4: memref<1x2x256xf32, #tpu.memory_space<vmem>>) attributes {dimension_semantics = [#tpu.dimension_semantics<parallel>], iteration_bounds = array<i64: 5>, scalar_prefetch = 0 : i64, scratch_operands = 0 : i64, tpu.core_type = #tpu.core_type<tc>, window_params = [{pipeline_mode = #tpu.pipeline_mode<synchronous>, transform_indices = @transform_0, window_bounds = array<i64: 2, 32>}, {transform_indices = @transform_1, window_bounds = array<i64: 1, 16, 32>}, {transform_indices = @transform_2, window_bounds = array<i64: 1, 8, 256>}, {transform_indices = @transform_3, window_bounds = array<i64: 1, 2, 256>}]} {
    %c0 = arith.constant 0 : index
    %c0_0 = arith.constant 0 : index
    %0 = vector.load %arg1[%c0, %c0_0] : memref<2x32xf32, #tpu.memory_space<vmem>>, vector<2x32xf32>
    %1 = arith.mulf %0, %0 : vector<2x32xf32>
    %2 = tpu.concatenate %0, %1 in 0 : vector<2x32xf32>, vector<2x32xf32> -> vector<4x32xf32>
    %c0_1 = arith.constant 0 : index
    %c0_2 = arith.constant 0 : index
    %c0_3 = arith.constant 0 : index
    %3 = vector.load %arg2[%c0_1, %c0_2, %c0_3] : memref<1x16x32xf32, #tpu.memory_space<vmem>>, vector<1x16x32xf32>
    %4 = vector.shape_cast %3 : vector<1x16x32xf32> to vector<16x32xf32>
    %cst = arith.constant dense<0.000000e+00> : vector<4x16xf32>
    %5 = tpu.matmul %2, %4, %cst {dimension_numbers = #tpu.dot_dimension_numbers<[1], [1], [0], [0], [0, 0, 1, 0], [], []>} : vector<4x32xf32>, vector<16x32xf32>, vector<4x16xf32> -> vector<4x16xf32>
    %6 = vector.extract_strided_slice %5 {offsets = [0, 0], sizes = [2, 8], strides = [1, 1]} : vector<4x16xf32> to vector<2x8xf32>
    %7 = vector.extract_strided_slice %5 {offsets = [2, 8], sizes = [2, 8], strides = [1, 1]} : vector<4x16xf32> to vector<2x8xf32>
    %cst_4 = arith.constant 1.000000e-24 : f32
    %8 = vector.broadcast %cst_4 : f32 to vector<2x8xf32>
    %9 = arith.maximumf %7, %8 : vector<2x8xf32>
    %10 = math.rsqrt %9 : vector<2x8xf32>
    %11 = arith.mulf %6, %10 : vector<2x8xf32>
    %c0_5 = arith.constant 0 : index
    %c0_6 = arith.constant 0 : index
    %c0_7 = arith.constant 0 : index
    %12 = vector.load %arg3[%c0_5, %c0_6, %c0_7] : memref<1x8x256xf32, #tpu.memory_space<vmem>>, vector<1x8x256xf32>
    %13 = vector.shape_cast %12 : vector<1x8x256xf32> to vector<8x256xf32>
    %cst_8 = arith.constant dense<0.000000e+00> : vector<2x256xf32>
    %14 = tpu.matmul %11, %13, %cst_8 {dimension_numbers = #tpu.dot_dimension_numbers<[1], [0], [0], [1], [0, 0, 1, 1], [], []>} : vector<2x8xf32>, vector<8x256xf32>, vector<2x256xf32> -> vector<2x256xf32>
    %c0_9 = arith.constant 0 : index
    %c0_10 = arith.constant 0 : index
    %c0_11 = arith.constant 0 : index
    %15 = vector.load %arg4[%c0_9, %c0_10, %c0_11] : memref<1x2x256xf32, #tpu.memory_space<vmem>>, vector<1x2x256xf32>
    %16 = vector.shape_cast %15 : vector<1x2x256xf32> to vector<2x256xf32>
    %17 = vector.shape_cast %14 : vector<2x256xf32> to vector<1x2x256xf32>
    tpu.vector_store %arg4[%c0_9, %c0_10, %c0_11], %17 {strides = array<i32>} : memref<1x2x256xf32, #tpu.memory_space<vmem>>, vector<1x2x256xf32>,
    return
  }
  func.func @transform_0(%arg0: i32) -> (i32, i32) {
    %c0_i32 = arith.constant 0 : i32
    %c0_i32_0 = arith.constant 0 : i32
    %c0_i32_1 = arith.constant 0 : i32
    return %c0_i32, %c0_i32_0 : i32, i32
  }
  func.func @transform_1(%arg0: i32) -> (i32, i32, i32) {
    %c0_i32 = arith.constant 0 : i32
    %c0_i32_0 = arith.constant 0 : i32
    %c0_i32_1 = arith.constant 0 : i32
    return %arg0, %c0_i32, %c0_i32_0 : i32, i32, i32
  }
  func.func @transform_2(%arg0: i32) -> (i32, i32, i32) {
    %c0_i32 = arith.constant 0 : i32
    %c0_i32_0 = arith.constant 0 : i32
    %c0_i32_1 = arith.constant 0 : i32
    return %arg0, %c0_i32, %c0_i32_0 : i32, i32, i32
  }
  func.func @transform_3(%arg0: i32) -> (i32, i32, i32) {
    %c0_i32 = arith.constant 0 : i32
    %c0_i32_0 = arith.constant 0 : i32
    %c0_i32_1 = arith.constant 0 : i32
    return %arg0, %c0_i32, %c0_i32_0 : i32, i32, i32
  }
}

</mosaic_0001>

<bundles_post_ra>
// kernel: _coda_pallas.1
= control target key start
LH: loop header
LB: loop body
LE: loop exit
PB: predicated region body
PF: predicated region fallthrough
CT: control target
= control target key end

     0   :  { %8 = vsyncpa [#allocation3], 0  ;;  %s1084_s0 = inlined_call_operand.hbm [shape: f32[2,32], index: 0, kind: input, shape index: {}]   ;;  %s1085_s1 = inlined_call_operand.hbm [shape: f32[5,16,32], index: 1, kind: input, shape index: {}]   ;;  %s1086_s2 = inlined_call_operand.hbm [shape: f32[5,8,256], index: 2, kind: input, shape index: {}]   ;;  %s1087_s3 = inlined_call_operand.hbm [shape: f32[5,2,256], index: 3, kind: output, shape index: {}]  }
   0x1   :  { %9 = vsyncpa [#allocation6], 0 }
   0x2   :  { %11 = vsyncpa [#allocation6 + $0x1], 0 }
   0x3   :  { %12 = vsyncpa [#allocation4], 0 }
   0x4   :  { %14 = vsyncpa [#allocation4 + $0x1], 0  ;;  %s842_s12 = smov 0   ;;  %s844_s13 = smov 0  }
   0x5   :  { %s846_s14 = smov 0   ;;  %s848_s15 = smov 0  }
   0x6 LB: > { %s863_s16 = sadd.s32 1, %s810_s15   ;;  %s48_s17 = sadd.s32 1, %s806_s14  ;;  %s810_s15 = sphi %s848_s15, %s1107_s15   ;;  %s806_s14 = sphi %s846_s14, %s1106_s14   ;;  %s802_s13 = sphi %s844_s13, %s1105_s13   ;;  %s798_s12 = sphi %s842_s12, %s1104_s12  }
   0x7   : > { %s45_s18 = ssub.s32 %s810_s15, %s863_s16  ;;  %p55_p0 = scmp.ne.s32.totalorder %s806_s14, %s802_s13 }
   0x8   : > { %p46_p1 = scmp.eq.s32.totalorder %s45_s18, 0  ;;  %p56_p2 = scmp.eq.s32.totalorder %s810_s15, 0 }
   0x9   : > { %p608_p3 = scmp.lt.s32.totalorder %s810_s15, 5  ;;  %s148_s20 = sand.u32 1, %s810_s15  }
   0xa   : > { %s873_s19 = scalar_select %p46_p1, %s806_s14, %s48_s17  }
   0xb   : > { %p57_p4 = por %p56_p2, %p55_p0  ;;  %s150_s21 = sand.u32 1, %s806_s14  }
   0xc   : > { %s880_s22 = sshll.u32 %s150_s21, 4  ;;  %s565_s23 = sshll.u32 %s810_s15, 8 }
   0xd   : > { %s888_s26 = scalar_lea.hbm %s1085_s1, %s565_s23  ;;  %s152_s27 = scalar_lea.vmem [#allocation5], %s880_s22 }
   0xe   : > { %s159_s28 = sshll.u32 %s152_s27, 4  ;;  %p891_p5 = pnand %p608_p3, %p57_p4  ;;  %s895_s28 = int_to_ptr.vmem [resolvable:$true] %s159_s28 }
   0xf   : > { %s897_s30 = scalar_lea.sflag [#allocation6], %s148_s20  ;;  %s652_s4 = scalar_lea.hbm %s888_s26, 256 }
  0x10   : > { %p653_p6 = scmp.ne.s32.totalorder %s888_s26, %s652_s4  ;;  %p654_p7 = pneg %p891_p5 }
  0x11   : > { %s657_s7 = scalar_lea.hbm %s1085_s1, 1280  ;;  %p658_p10 = scmp.lt.u32.totalorder %s888_s26, %s1085_s1 }
  0x12   : > { %p655_p8 = pnand %p654_p7, %p653_p6  ;;  %p659_p11 = scmp.lt.u32.totalorder %s657_s7, %s652_s4 }
  0x13   : > { %p661_p13 = scmp.lt.u32.totalorder %s652_s4, %s888_s26 }
  0x14   : > { %p656_p9 = pneg %p655_p8  ;;  %p660_p12 = por %p659_p11, %p658_p10 }
  0x16   : > { %p662_p1 = por %p661_p13, %p660_p12 }
  0x18   : > { %p663_p2 = pnand %p662_p1, %p656_p9 }
  0x1a   : > { %666 = shalt.err (!%p663_p2)
}
  0x1b   : > { %s667_s10 = scalar_lea.vmem %s895_s28, 256  ;;  %s812_s11 = smov [#allocation5]  }
  0x1c   : > { %p668_p3 = scmp.ne.s32.totalorder %s895_s28, %s667_s10  ;;  %s672_s17 = sshll.u32 %s812_s11, 4  ;;  %s673_s17 = int_to_ptr.vmem [resolvable:$false] %s672_s17 }
  0x1d   : > { %s674_s18 = scalar_lea.vmem %s673_s17, 512  ;;  %p675_p8 = scmp.lt.s32.totalorder %s895_s28, %s673_s17 }
  0x1e   : > { %p670_p4 = pnand %p668_p3, %p654_p7  ;;  %p676_p10 = scmp.lt.s32.totalorder %s674_s18, %s667_s10 }
  0x20   : > { %p671_p6 = pneg %p670_p4  ;;  %p677_p11 = por %p676_p10, %p675_p8 }
  0x22   : > { %p678_p12 = pnand %p677_p11, %p671_p6 }
  0x24   : > { %681 = shalt.err (!%p678_p12)
}
  0x25   : > { %s813_s20 = smov 128   ;;  %s814_s21 = smov 8  }
  0x26   : > { %599 = dma.hbm_to_vmem [thread:$0]  (!%p891_p5), %s888_s26, 256, %s895_s28, %s897_s30, %s813_s20, %s813_s20, %s814_s21  }
  0x27   : > { %s926_s24 = sadd.s32 4294967295, %s810_s15   ;;  %s540_s25 = sadd.s32 4294967294, %s810_s15  }
  0x28   : > { %p61_p9 = scmp.ne.s32.totalorder %s802_s13, %s798_s12  ;;  %p1088_p13 = scmp.eq.s32.totalorder %s926_s24, 0 }
  0x29   : > { %p111_p1 = scmp.eq.s32.totalorder %s926_s24, 4  ;;  %p117_p2 = scmp.eq.s32.totalorder %s540_s25, 4 }
  0x2a   : > { %p935_p3 = por %p1088_p13, %p61_p9  ;;  %p541_p4 = scmp.ge.s32.totalorder %s810_s15, 1 }
  0x2b   : > { %p943_p6 = por %p111_p1, %p55_p0  ;;  %p947_p8 = por %p117_p2, %p61_p9 }
  0x2c   : > { %s1093_s27 = scalar_select %p935_p3, 1, 0 }
  0x2d   : > { %s1094_s26 = scalar_select %p943_p6, 1, 0 }
  0x2e   : > { %s1095_s28 = scalar_select %p947_p8, 1, 0 }
  0x2f   : > { %p124_p10 = scmp.lt.s32.totalorder %s810_s15, 6  ;;  %s815_s5 = smov [#allocation2]  }
  0x30   : > { %s137_s6 = sshll.u32 %s815_s5, 4  ;;  %s961_s9 = scalar_lea.hbm %s1086_s2, %s565_s23  ;;  %s968_s6 = int_to_ptr.vmem [resolvable:$true] %s137_s6 }
  0x31   : > { %p952_p11 = pnand %p541_p4, %p124_p10  ;;  %s173_s10 = scalar_lea.vmem [#allocation7], %s880_s22 }
  0x32   : > { %s181_s11 = sshll.u32 %s173_s10, 4  ;;  %s682_s18 = scalar_lea.hbm %s961_s9, 256  ;;  %s966_s11 = int_to_ptr.vmem [resolvable:$true] %s181_s11 }
  0x33   : > { %s1096_s4 = scalar_select %p952_p11, 1, 0 }
  0x34   : > { %p592_p0 = pneg %p952_p11  ;;  %p683_p9 = scmp.ne.s32.totalorder %s961_s9, %s682_s18 }
  0x35   : > { %s687_s22 = scalar_lea.hbm %s1086_s2, 1280  ;;  %p688_p4 = scmp.lt.u32.totalorder %s961_s9, %s1086_s2 }
  0x36   : > { %p972_p12 = pnand %p592_p0, %p1088_p13  ;;  %p685_p1 = pnand %p683_p9, %p654_p7 }
  0x37   : > { %p689_p10 = scmp.lt.u32.totalorder %s687_s22, %s682_s18  ;;  %p691_p0 = scmp.lt.u32.totalorder %s682_s18, %s961_s9 }
  0x38   : > { %p686_p2 = pneg %p685_p1 }
  0x39   : > { %p690_p8 = por %p689_p10, %p688_p4 }
  0x3b   : > { %p692_p13 = por %p691_p0, %p690_p8 }
  0x3d   : > { %p693_p6 = pnand %p692_p13, %p686_p2 }
  0x3f   : > { %696 = shalt.err (!%p693_p6)
}
  0x40   : > { %s697_s5 = scalar_lea.vmem %s966_s11, 256  ;;  %s816_s7 = smov [#allocation7]  }
  0x41   : > { %p698_p9 = scmp.ne.s32.totalorder %s966_s11, %s697_s5  ;;  %s702_s8 = sshll.u32 %s816_s7, 4  ;;  %s703_s8 = int_to_ptr.vmem [resolvable:$false] %s702_s8 }
  0x42   : > { %s704_s10 = scalar_lea.vmem %s703_s8, 512  ;;  %p705_p11 = scmp.lt.s32.totalorder %s966_s11, %s703_s8 }
  0x43   : > { %p700_p1 = pnand %p698_p9, %p654_p7  ;;  %p706_p4 = scmp.lt.s32.totalorder %s704_s10, %s697_s5 }
  0x45   : > { %p701_p3 = pneg %p700_p1  ;;  %p707_p10 = por %p706_p4, %p705_p11 }
  0x47   : > { %p708_p8 = pnand %p707_p10, %p701_p3 }
  0x49   : > { %711 = shalt.err (!%p708_p8)
}
  0x4a   : > { %602 = dma.hbm_to_vmem [thread:$0]  (!%p891_p5), %s961_s9, 256, %s966_s11, %s897_s30  }
  0x4b   : > { %s712_s20 = scalar_lea.hbm %s1084_s0, 32  ;;  %p714_p13 = pneg %p972_p12 }
  0x4c   : > { %p713_p7 = scmp.ne.s32.totalorder %s1084_s0, %s712_s20  ;;  %p719_p11 = scmp.lt.u32.totalorder %s712_s20, %s1084_s0 }
  0x4e   : > { %p715_p6 = pnand %p714_p13, %p713_p7 }
  0x50   : > { %p716_p3 = pneg %p715_p6 }
  0x52   : > { %p721_p2 = pnand %p719_p11, %p716_p3 }
  0x54   : > { %724 = shalt.err (!%p721_p2)
}
  0x55   : > { %s725_s29 = scalar_lea.vmem %s968_s6, 32  ;;  %p733_p1 = scmp.lt.s32.totalorder %s968_s6, %s968_s6 }
  0x56   : > { %p726_p5 = scmp.ne.s32.totalorder %s968_s6, %s725_s29  ;;  %p734_p4 = scmp.lt.s32.totalorder %s725_s29, %s725_s29 }
  0x58   : > { %p728_p0 = pnand %p726_p5, %p714_p13  ;;  %p735_p10 = por %p734_p4, %p733_p1 }
  0x5a   : > { %p729_p9 = pneg %p728_p0 }
  0x5c   : > { %p736_p8 = pnand %p735_p10, %p729_p9 }
  0x5e   : > { %739 = shalt.err (!%p736_p8)
}
  0x5f   : > { %595 = dma.hbm_to_vmem [thread:$0]  (!%p972_p12), %s1084_s0, 32, %s968_s6, [#allocation3]  }
  0x60   : > { %p1098_p7 = scmp.ne.s32.totalorder %s1096_s4, 0 }
  0x61   : > { %p1099_p6 = scmp.eq.s32.totalorder (!%p1098_p7), %s926_s24, 0 }
  0x62   : > { %190 = sbr.rel (%p1098_p7) target bundleno = 695 (0x2b7), region = 32 }
  0x69   : > { %785 = dma.done.wait (%p1099_p6), [#allocation3], 32   ;;  %p1100_p13 = pmov %p1099_p6 }
  0x6a   : > { %s196_s11 = sand.u32 1, %s926_s24   ;;  %s1029_s7 = sand.u32 1, %s802_s13  }
  0x6b   : > { %787 = vsyncadd (%p1100_p13), [#allocation3], 4294967264  ;;  %s552_s17 = sshll.u32 %s1029_s7, 4  ;;  %s197_s8 = scalar_lea.sflag [#allocation6], %s196_s11 }
  0x6c   : > { %s200_s10 = scalar_lea.vmem [#allocation5], %s552_s17  ;;  %p1101_p12 = scmp.ne.s32.totalorder %s1093_s27, 0 }
  0x6e   : > { %789 = dma.done.wait (%p1101_p12), %s197_s8, 512  }
  0x6f   : > { %791 = vsyncadd (%p1101_p12), %s197_s8, 4294966784  ;;  %v817_v0 = vmov 0.0|0.0   ;;  %vm818_vm0 = vmmov 0   ;;  %v819_v1 = vmov 0.0   ;;  %vm246_vm1 = vcmask 261120   ;;  %v244_v2 = vld [vmem:[%s200_s10] sm:$0xff] }
  0x70   : > { %578 = vmatprep.subr.bf16.mxu0 %v817_v0  ;;  %575 = vmatprep.mubr.msk.f32.mxu0 %vm818_vm0, %v819_v1  ;;  %vm580_vm2 = vmpackc.low %vm246_vm1, %vm246_vm1  ;;  %v245_v3 = vld [vmem:[%s200_s10 + $0x8] sm:$0xff]  ;;  %vm242_vm3 = vcmask 1041408   ;;  %s209_s27 = scalar_lea.vmem [#allocation7], %s552_s17  ;;  %s820_s4 = smov 120   ;;  %vm336_vm4 = vcmask 64512  }
  0x71   : > { %404 = vmatprep.mubr.f32.mxu1 %v819_v1  ;;  %v237_v4 = vld [vmem:[#allocation2] sm:$0x3]  ;;  %v579_v5 = vpack.c.bf16 %v245_v3, %v244_v2  ;;  %v334_v13 = vld [vmem:[%s209_s27] sm:$0xff]  ;;  %s554_s6 = sshll.u32 %s1029_s7, 2  ;;  %s567_s18 = sshll.u32 %s926_s24, 6 }
  0x72   : > { %v238_v6 = vmul.f32 %v237_v4, %v237_v4  ;;  %v335_v12 = vld [vmem:[%s209_s27 + $0x8] sm:$0xff]  ;;  %s236_s23 = scalar_lea.vmem [#allocation8], %s554_s6  ;;  %s1041_s25 = scalar_lea.hbm %s1087_s3, %s567_s18 }
  0x73   : > { %581 = vmatpush3.bf16.xpose.msk.msra.mxu0 %vm580_vm2, %v579_v5  ;;  %340 = vmatprep.subr.mxu1 %v335_v12  ;;  %s438_s20 = sshll.u32 %s236_s23, 4  ;;  %s424_s5 = scalar_lea.sflag [#allocation4], %s1029_s7  ;;  %s1043_s20 = int_to_ptr.vmem [resolvable:$true] %s438_s20 }
  0x74   : > { %v240_v7 = vrot.slane %v238_v6, 6  ;;  %341 = vmatpush1.msra.mxu1 %v334_v13  ;;  %s740_s29 = scalar_lea.vmem %s1043_s20, 64  ;;  %p1102_p11 = scmp.ne.s32.totalorder %s1094_s26, 0 }
  0x75   : > { %p741_p3 = scmp.ne.s32.totalorder %s1043_s20, %s740_s29  ;;  %s821_s24 = smov [#allocation8]  }
  0x76   : > { %v243_v8 = vsel %vm242_vm3, %v237_v4, %v240_v7  ;;  %s744_s30 = sshll.u32 %s821_s24, 4  ;;  %s745_s30 = int_to_ptr.vmem [resolvable:$false] %s744_s30 }
  0x77   : > { %p742_p2 = pnand %p741_p3, %p1102_p11  ;;  %s746_s9 = scalar_lea.vmem %s745_s30, 128 }
  0x78   : > { %p747_p0 = scmp.lt.s32.totalorder %s1043_s20, %s745_s30  ;;  %p748_p9 = scmp.lt.s32.totalorder %s746_s9, %s740_s29 }
  0x79   : > { %p743_p5 = pneg %p742_p2 }
  0x7a   : > { %576 = vmatmul.mubr.msk.f32.vlgmr.msra.gmra.mrb[0].mxu0 %vm246_vm1, %v243_v8  ;;  %p749_p1 = por %p748_p9, %p747_p0 }
  0x7c   : > { %p750_p4 = pnand %p749_p1, %p743_p5 }
 0x14d   : > { %v322_v9 = vpop.f32.mrb[0].mxu0 }
 0x14e   : > { %v326_v10 = vmax.f32 %v322_v9, 1e-24  ;;  %v577_v11 = vpop.f32.mrb[1].mxu0 }
 0x150   : > { %650 = vrsqrt.f32 %v326_v10 }
 0x15a   : > { %v651_v14 = vpop.eup %650 }
 0x15b   : > { %v329_v15 = vrot.slane %v651_v14, 2 }
 0x15d   : > { %330 = vrot.lane.b32.xlu0 %v329_v15, %s820_s4 }
 0x1cf   : > { %v331_v16 = vpop.permute.xlu0 %330 }
 0x1d0   : > { %v333_v17 = vmul.f32 %v331_v16, %v322_v9 }
 0x1d2   : > { %558 = vmatmul.mubr.msk.f32.vlgmr.msra.gmra.mrb[0].mxu1 %vm336_vm4, %v333_v17 }
 0x2a5   : > { %v406_v18 = vpop.f32.mrb[0].mxu1 }
 0x2a6   : > { %v408_v19 = vpop.f32.mrb[1].mxu1 }
 0x2a7   : > { %v413_v20 = vcombine.low %v406_v18, %v408_v19 }
 0x2a9   : > { %559 = vst.sshfl [vmem:[%s236_s23] sm:$0x33 pattern:$0x76325410] %v413_v20 }
 0x2aa   : > { %753 = shalt.err (!%p750_p4)
}
 0x2ab   : > { %s754_s11 = scalar_lea.hbm %s1041_s25, 64  ;;  %s758_s8 = scalar_lea.hbm %s1087_s3, 320 }
 0x2ac   : > { %p755_p10 = scmp.ne.s32.totalorder %s1041_s25, %s754_s11  ;;  %p759_p6 = scmp.lt.u32.totalorder %s1041_s25, %s1087_s3 }
 0x2ad   : > { %p760_p13 = scmp.lt.u32.totalorder %s758_s8, %s754_s11  ;;  %p762_p3 = scmp.lt.u32.totalorder %s754_s11, %s1041_s25 }
 0x2ae   : > { %p756_p8 = pnand %p755_p10, %p1102_p11 }
 0x2af   : > { %p761_p12 = por %p760_p13, %p759_p6 }
 0x2b0   : > { %p757_p7 = pneg %p756_p8 }
 0x2b1   : > { %p763_p2 = por %p762_p3, %p761_p12 }
 0x2b3   : > { %p764_p5 = pnand %p763_p2, %p757_p7 }
 0x2b5   : > { %767 = shalt.err (!%p764_p5)
}
 0x2b6   : > { %590 = dma.vmem_to_hbm [thread:$0]  (%p1102_p11), %s1043_s20, 64, %s1041_s25, %s424_s5  }
 0x2b7 PF: > { %p610_p0 = scmp.ge.s32.totalorder %s810_s15, 2  ;;  %s450_s4 = sand.u32 1, %s798_s12  }
 0x2b8   : > { %p1103_p9 = scmp.ne.s32.totalorder %s1095_s28, 0  ;;  %s451_s6 = scalar_lea.sflag [#allocation4], %s450_s4 }
 0x2ba   : > { %p604_p1 = pnand %p610_p0, %p1103_p9 }
 0x2bc   : > { %793 = dma.done.wait (!%p604_p1), %s451_s6, 64  }
 0x2bd   : > { %795 = vsyncadd (!%p604_p1), %s451_s6, 4294967232  ;;  %p17_p4 = scmp.ge.s32.totalorder %s863_s16, 7   ;;  %s1104_s12 = smov %s802_s13 }
 0x2be   : > { %s1105_s13 = smov %s806_s14  ;;  %s1106_s14 = smov %s873_s19 }
 0x2bf   : > { %s1107_s15 = smov %s863_s16  ;;  %19 = sbr.rel (!%p17_p4) target bundleno = 6 (0x6), region = 93 }
 0x2c6   :  { %456 = vsyncpa [#allocation3], 1 }
 0x2c7   :  { %458 = vsyncpa [#allocation3 + $0x1], 1 }
 0x2c8   :  { %459 = vsyncpa [#allocation6], 1 }
 0x2c9   :  { %461 = vsyncpa [#allocation6 + $0x1], 1 }
 0x2ca   :  { %462 = vsyncpa [#allocation4], 1 }
 0x2cb   :  { %464 = vsyncpa [#allocation4 + $0x1], 1 }

</bundles_post_ra>
